<compile_context>
chip_gen: v5e
topology: v5e:2x2
jax: 0.10.0
libtpu: 0.0.40
codegen_flags: <defaults>
</compile_context>

<pallas_src>
import functools
import math

import jax
import jax.numpy as jnp
from jax.experimental import pallas as pl
from jax.experimental.pallas import tpu as pltpu

SUBLANE = 8                       # f32 sublane tile
_VMEM_BUDGET = 48 * 1024 * 1024   # stay well under v7x's 64 MiB physical VMEM


def _round_up(x, m):
    return ((x + m - 1) // m) * m


def _mlp_fused_kernel(*refs, num_linear, negative_slope):
    """Fused MLP forward on one batch tile; all weights resident in VMEM.

    refs = (x_ref, w0_ref, b0_ref, w1_ref, b1_ref, ..., o_ref)
      x_ref : [tile_b, D0]       f32
      wi_ref: [Di, D(i+1)]       bf16  (pre-transposed: y = x @ W)
      bi_ref: [1,  D(i+1)]       f32
      o_ref : [tile_b, DL]       f32
    """
    x_ref = refs[0]
    o_ref = refs[-1]
    wb = refs[1:-1]

    h = x_ref[...].astype(jnp.float32)
    for i in range(num_linear):
        w_ref = wb[2 * i]
        b_ref = wb[2 * i + 1]
        # bf16 x bf16 on the MXU, f32 accumulation.
        y = jnp.dot(h.astype(w_ref.dtype), w_ref[...],
                    preferred_element_type=jnp.float32) + b_ref[...]
        if i < num_linear - 1:
            # LeakyReLU (single VPU max). Dropout is identity at inference.
            y = jnp.maximum(y, negative_slope * y)
        h = y
    o_ref[...] = h.astype(o_ref.dtype)


def init_params(key, input_dim, output_dim, n_layers, n_units,
                weight_dtype=jnp.bfloat16):
    """Xavier-uniform weights (stored transposed, bf16), zero biases (f32)."""
    dims = [input_dim] + [n_units] * n_layers + [output_dim]
    params = []
    for li in range(len(dims) - 1):
        in_f, out_f = dims[li], dims[li + 1]
        key, sub = jax.random.split(key)
        limit = math.sqrt(6.0 / (in_f + out_f))
        w = jax.random.uniform(sub, (out_f, in_f), jnp.float32, -limit, limit)
        wt = w.T.astype(weight_dtype)            # [in, out], no lane padding
        b = jnp.zeros((1, out_f), jnp.float32)
        params.append((wt, b))
    return params, dims


def deep_nn_forward(x, params, dims, *, negative_slope=0.01, batch_tile=256):
    """Forward pass of DeepNeuralNetwork2 (inference), one pallas_call."""
    batch, in_f = x.shape
    assert in_f == dims[0]
    out_f = dims[-1]
    num_linear = len(params)

    # Batch tiling: sublane-align; tile only when batch is large enough that a
    # "parallel" grid axis can feed both v7x TensorCores. At batch=8 this is a
    # single grid step with no padding and no wrapper copies.
    batch_p = _round_up(batch, SUBLANE)
    tile_b = min(batch_p, _round_up(batch_tile, SUBLANE))
    batch_p = _round_up(batch_p, tile_b)
    grid = (batch_p // tile_b,)

    if batch_p != batch:
        x_in = jnp.zeros((batch_p, in_f), x.dtype).at[:batch].set(x)
    else:
        x_in = x

    flat_args = [x_in]
    in_specs = [pl.BlockSpec((tile_b, in_f), lambda i: (i, 0))]
    for wt, b in params:
        flat_args += [wt, b]
        in_specs.append(pl.BlockSpec(wt.shape, lambda i: (0, 0)))
        in_specs.append(pl.BlockSpec(b.shape, lambda i: (0, 0)))
    out_specs = pl.BlockSpec((tile_b, out_f), lambda i: (i, 0))

    # --- VMEM guard: all weights resident + double-buffered activation tiles.
    def nbytes(a):
        return a.size * a.dtype.itemsize

    weight_bytes = sum(nbytes(wt) + nbytes(b) for wt, b in params)
    io_bytes = 2 * (tile_b * in_f + tile_b * out_f) * 4       # double-buffered
    hidden_bytes = 2 * tile_b * max(dims) * 4                  # live activations
    footprint = weight_bytes + io_bytes + hidden_bytes
    assert footprint <= _VMEM_BUDGET, (
        f"MLP ({footprint} B) does not fit resident in VMEM; "
        "switch to a layer-streamed grid over stacked weights.")
    vmem_limit = int(min(max(2 * footprint, 16 << 20), 64 << 20))

    flops = 2 * sum(batch_p * dims[i] * dims[i + 1] for i in range(num_linear))
    bytes_accessed = nbytes(x_in) + weight_bytes + batch_p * out_f * 4

    kernel = functools.partial(
        _mlp_fused_kernel,
        num_linear=num_linear,
        negative_slope=negative_slope,
    )
    out = pl.pallas_call(
        kernel,
        out_shape=jax.ShapeDtypeStruct((batch_p, out_f), jnp.float32),
        grid=grid,
        in_specs=in_specs,
        out_specs=out_specs,
        compiler_params=pltpu.CompilerParams(
            dimension_semantics=("parallel",),
            vmem_limit_bytes=vmem_limit,
        ),
        cost_estimate=pl.CostEstimate(
            flops=flops, transcendentals=0, bytes_accessed=bytes_accessed),
    )(*flat_args)

    if batch_p != batch:
        out = out[:batch]
    return out


if __name__ == "__main__":
    # Small, deterministic configuration consistent with the module's __init__.
    input_dim = 32
    output_dim = 8
    n_layers = 3
    n_units = 32
    batch = 8

    key = jax.random.PRNGKey(0)
    key_x, key_p = jax.random.split(key)

    x = jax.random.normal(key_x, (batch, input_dim), dtype=jnp.float32)
    params, dims = init_params(key_p, input_dim, output_dim, n_layers, n_units)

    out = deep_nn_forward(x, params, dims)
    jax.block_until_ready(out)

    # Pure-JAX reference using the same bf16-rounded weights (f32 math).
    # Tolerance relaxed vs. the old f32-exact check because the kernel also
    # rounds activations to bf16 at each MXU input.
    h_ref = x
    for idx, (wt, b) in enumerate(params):
        h_ref = h_ref @ wt.astype(jnp.float32) + b[0]
        if idx < len(params) - 1:
            h_ref = jnp.maximum(h_ref, 0.01 * h_ref)

    assert out.shape == (batch, output_dim)
    max_err = float(jnp.max(jnp.abs(out - h_ref)))
    assert jnp.allclose(out, h_ref, atol=3e-2, rtol=3e-2), max_err

    print("KERNEL_OK")
</pallas_src>

<mosaic_0001>
module attributes {stable_mosaic.version = 11 : i64} {
  func.func @_mlp_fused_kernel(%arg0: i32, %arg1: memref<8x32xf32, #tpu.memory_space<vmem>>, %arg2: memref<32x32xbf16, #tpu.memory_space<vmem>>, %arg3: memref<1x32xf32, #tpu.memory_space<vmem>>, %arg4: memref<32x32xbf16, #tpu.memory_space<vmem>>, %arg5: memref<1x32xf32, #tpu.memory_space<vmem>>, %arg6: memref<32x32xbf16, #tpu.memory_space<vmem>>, %arg7: memref<1x32xf32, #tpu.memory_space<vmem>>, %arg8: memref<32x8xbf16, #tpu.memory_space<vmem>>, %arg9: memref<1x8xf32, #tpu.memory_space<vmem>>, %arg10: memref<8x8xf32, #tpu.memory_space<vmem>>) attributes {dimension_semantics = [#tpu.dimension_semantics<parallel>], iteration_bounds = array<i64: 1>, scalar_prefetch = 0 : i64, scratch_operands = 0 : i64, tpu.core_type = #tpu.core_type<tc>, window_params = [{transform_indices = @transform_0, window_bounds = array<i64: 8, 32>}, {pipeline_mode = #tpu.pipeline_mode<synchronous>, transform_indices = @transform_1, window_bounds = array<i64: 32, 32>}, {pipeline_mode = #tpu.pipeline_mode<synchronous>, transform_indices = @transform_2, window_bounds = array<i64: 1, 32>}, {pipeline_mode = #tpu.pipeline_mode<synchronous>, transform_indices = @transform_3, window_bounds = array<i64: 32, 32>}, {pipeline_mode = #tpu.pipeline_mode<synchronous>, transform_indices = @transform_4, window_bounds = array<i64: 1, 32>}, {pipeline_mode = #tpu.pipeline_mode<synchronous>, transform_indices = @transform_5, window_bounds = array<i64: 32, 32>}, {pipeline_mode = #tpu.pipeline_mode<synchronous>, transform_indices = @transform_6, window_bounds = array<i64: 1, 32>}, {pipeline_mode = #tpu.pipeline_mode<synchronous>, transform_indices = @transform_7, window_bounds = array<i64: 32, 8>}, {pipeline_mode = #tpu.pipeline_mode<synchronous>, transform_indices = @transform_8, window_bounds = array<i64: 1, 8>}, {transform_indices = @transform_9, window_bounds = array<i64: 8, 8>}]} {
    %c0 = arith.constant 0 : index
    %c0_0 = arith.constant 0 : index
    %0 = vector.load %arg1[%c0, %c0_0] : memref<8x32xf32, #tpu.memory_space<vmem>>, vector<8x32xf32>
    %1 = arith.truncf %0 : vector<8x32xf32> to vector<8x32xbf16>
    %c0_1 = arith.constant 0 : index
    %c0_2 = arith.constant 0 : index
    %2 = vector.load %arg2[%c0_1, %c0_2] : memref<32x32xbf16, #tpu.memory_space<vmem>>, vector<32x32xbf16>
    %cst = arith.constant dense<0.000000e+00> : vector<8x32xf32>
    %3 = tpu.matmul %1, %2, %cst {dimension_numbers = #tpu.dot_dimension_numbers<[1], [0], [0], [1], [0, 0, 1, 1], [], []>} : vector<8x32xbf16>, vector<32x32xbf16>, vector<8x32xf32> -> vector<8x32xf32>
    %c0_3 = arith.constant 0 : index
    %c0_4 = arith.constant 0 : index
    %4 = vector.load %arg3[%c0_3, %c0_4] : memref<1x32xf32, #tpu.memory_space<vmem>>, vector<1x32xf32>
    %5 = vector.broadcast %4 : vector<1x32xf32> to vector<8x32xf32>
    %6 = arith.addf %3, %5 : vector<8x32xf32>
    %cst_5 = arith.constant 0.00999999977 : f32
    %7 = vector.broadcast %cst_5 : f32 to vector<8x32xf32>
    %8 = arith.mulf %7, %6 : vector<8x32xf32>
    %9 = arith.maximumf %6, %8 : vector<8x32xf32>
    %10 = arith.truncf %9 : vector<8x32xf32> to vector<8x32xbf16>
    %c0_6 = arith.constant 0 : index
    %c0_7 = arith.constant 0 : index
    %11 = vector.load %arg4[%c0_6, %c0_7] : memref<32x32xbf16, #tpu.memory_space<vmem>>, vector<32x32xbf16>
    %cst_8 = arith.constant dense<0.000000e+00> : vector<8x32xf32>
    %12 = tpu.matmul %10, %11, %cst_8 {dimension_numbers = #tpu.dot_dimension_numbers<[1], [0], [0], [1], [0, 0, 1, 1], [], []>} : vector<8x32xbf16>, vector<32x32xbf16>, vector<8x32xf32> -> vector<8x32xf32>
    %c0_9 = arith.constant 0 : index
    %c0_10 = arith.constant 0 : index
    %13 = vector.load %arg5[%c0_9, %c0_10] : memref<1x32xf32, #tpu.memory_space<vmem>>, vector<1x32xf32>
    %14 = vector.broadcast %13 : vector<1x32xf32> to vector<8x32xf32>
    %15 = arith.addf %12, %14 : vector<8x32xf32>
    %cst_11 = arith.constant 0.00999999977 : f32
    %16 = vector.broadcast %cst_11 : f32 to vector<8x32xf32>
    %17 = arith.mulf %16, %15 : vector<8x32xf32>
    %18 = arith.maximumf %15, %17 : vector<8x32xf32>
    %19 = arith.truncf %18 : vector<8x32xf32> to vector<8x32xbf16>
    %c0_12 = arith.constant 0 : index
    %c0_13 = arith.constant 0 : index
    %20 = vector.load %arg6[%c0_12, %c0_13] : memref<32x32xbf16, #tpu.memory_space<vmem>>, vector<32x32xbf16>
    %cst_14 = arith.constant dense<0.000000e+00> : vector<8x32xf32>
    %21 = tpu.matmul %19, %20, %cst_14 {dimension_numbers = #tpu.dot_dimension_numbers<[1], [0], [0], [1], [0, 0, 1, 1], [], []>} : vector<8x32xbf16>, vector<32x32xbf16>, vector<8x32xf32> -> vector<8x32xf32>
    %c0_15 = arith.constant 0 : index
    %c0_16 = arith.constant 0 : index
    %22 = vector.load %arg7[%c0_15, %c0_16] : memref<1x32xf32, #tpu.memory_space<vmem>>, vector<1x32xf32>
    %23 = vector.broadcast %22 : vector<1x32xf32> to vector<8x32xf32>
    %24 = arith.addf %21, %23 : vector<8x32xf32>
    %cst_17 = arith.constant 0.00999999977 : f32
    %25 = vector.broadcast %cst_17 : f32 to vector<8x32xf32>
    %26 = arith.mulf %25, %24 : vector<8x32xf32>
    %27 = arith.maximumf %24, %26 : vector<8x32xf32>
    %28 = arith.truncf %27 : vector<8x32xf32> to vector<8x32xbf16>
    %c0_18 = arith.constant 0 : index
    %c0_19 = arith.constant 0 : index
    %29 = vector.load %arg8[%c0_18, %c0_19] : memref<32x8xbf16, #tpu.memory_space<vmem>>, vector<32x8xbf16>
    %cst_20 = arith.constant dense<0.000000e+00> : vector<8x8xf32>
    %30 = tpu.matmul %28, %29, %cst_20 {dimension_numbers = #tpu.dot_dimension_numbers<[1], [0], [0], [1], [0, 0, 1, 1], [], []>} : vector<8x32xbf16>, vector<32x8xbf16>, vector<8x8xf32> -> vector<8x8xf32>
    %c0_21 = arith.constant 0 : index
    %c0_22 = arith.constant 0 : index
    %31 = vector.load %arg9[%c0_21, %c0_22] : memref<1x8xf32, #tpu.memory_space<vmem>>, vector<1x8xf32>
    %32 = vector.broadcast %31 : vector<1x8xf32> to vector<8x8xf32>
    %33 = arith.addf %30, %32 : vector<8x8xf32>
    %c0_23 = arith.constant 0 : index
    %c0_24 = arith.constant 0 : index
    %34 = vector.load %arg10[%c0_23, %c0_24] : memref<8x8xf32, #tpu.memory_space<vmem>>, vector<8x8xf32>
    tpu.vector_store %arg10[%c0_23, %c0_24], %33 {strides = array<i32>} : memref<8x8xf32, #tpu.memory_space<vmem>>, vector<8x8xf32>,
    return
  }
  func.func @transform_0(%arg0: i32) -> (i32, i32) {
    %c0_i32 = arith.constant 0 : i32
    %c0_i32_0 = arith.constant 0 : i32
    return %arg0, %c0_i32 : i32, i32
  }
  func.func @transform_1(%arg0: i32) -> (i32, i32) {
    %c0_i32 = arith.constant 0 : i32
    %c0_i32_0 = arith.constant 0 : i32
    %c0_i32_1 = arith.constant 0 : i32
    return %c0_i32, %c0_i32_0 : i32, i32
  }
  func.func @transform_2(%arg0: i32) -> (i32, i32) {
    %c0_i32 = arith.constant 0 : i32
    %c0_i32_0 = arith.constant 0 : i32
    %c0_i32_1 = arith.constant 0 : i32
    return %c0_i32, %c0_i32_0 : i32, i32
  }
  func.func @transform_3(%arg0: i32) -> (i32, i32) {
    %c0_i32 = arith.constant 0 : i32
    %c0_i32_0 = arith.constant 0 : i32
    %c0_i32_1 = arith.constant 0 : i32
    return %c0_i32, %c0_i32_0 : i32, i32
  }
  func.func @transform_4(%arg0: i32) -> (i32, i32) {
    %c0_i32 = arith.constant 0 : i32
    %c0_i32_0 = arith.constant 0 : i32
    %c0_i32_1 = arith.constant 0 : i32
    return %c0_i32, %c0_i32_0 : i32, i32
  }
  func.func @transform_5(%arg0: i32) -> (i32, i32) {
    %c0_i32 = arith.constant 0 : i32
    %c0_i32_0 = arith.constant 0 : i32
    %c0_i32_1 = arith.constant 0 : i32
    return %c0_i32, %c0_i32_0 : i32, i32
  }
  func.func @transform_6(%arg0: i32) -> (i32, i32) {
    %c0_i32 = arith.constant 0 : i32
    %c0_i32_0 = arith.constant 0 : i32
    %c0_i32_1 = arith.constant 0 : i32
    return %c0_i32, %c0_i32_0 : i32, i32
  }
  func.func @transform_7(%arg0: i32) -> (i32, i32) {
    %c0_i32 = arith.constant 0 : i32
    %c0_i32_0 = arith.constant 0 : i32
    %c0_i32_1 = arith.constant 0 : i32
    return %c0_i32, %c0_i32_0 : i32, i32
  }
  func.func @transform_8(%arg0: i32) -> (i32, i32) {
    %c0_i32 = arith.constant 0 : i32
    %c0_i32_0 = arith.constant 0 : i32
    %c0_i32_1 = arith.constant 0 : i32
    return %c0_i32, %c0_i32_0 : i32, i32
  }
  func.func @transform_9(%arg0: i32) -> (i32, i32) {
    %c0_i32 = arith.constant 0 : i32
    %c0_i32_0 = arith.constant 0 : i32
    return %arg0, %c0_i32 : i32, i32
  }
}

</mosaic_0001>

<bundles_post_ra>
// kernel: tpu_custom_call.1
= control target key start
LH: loop header
LB: loop body
LE: loop exit
PB: predicated region body
PF: predicated region fallthrough
CT: control target
= control target key end

     0   :  { %14 = vsyncpa [#allocation3], 0  ;;  %s507_s0 = inlined_call_operand.hbm [shape: f32[8,32], index: 0, kind: input, shape index: {}]   ;;  %s508_s1 = inlined_call_operand.vmem [shape: bf16[32,32], index: 1, kind: input, shape index: {}]   ;;  %s509_s2 = inlined_call_operand.vmem [shape: f32[1,32], index: 2, kind: input, shape index: {}]   ;;  %s510_s3 = inlined_call_operand.hbm [shape: bf16[32,32], index: 3, kind: input, shape index: {}]   ;;  %s511_s4 = inlined_call_operand.vmem [shape: f32[1,32], index: 4, kind: input, shape index: {}]   ;;  %s512_s5 = inlined_call_operand.hbm [shape: bf16[32,32], index: 5, kind: input, shape index: {}]   ;;  %s513_s6 = inlined_call_operand.vmem [shape: f32[1,32], index: 6, kind: input, shape index: {}]   ;;  %s514_s7 = inlined_call_operand.vmem [shape: bf16[32,8], index: 7, kind: input, shape index: {}]   ;;  %s515_s8 = inlined_call_operand.vmem [shape: f32[1,8], index: 8, kind: input, shape index: {}]   ;;  %s516_s9 = inlined_call_operand.hbm [shape: f32[8,8], index: 9, kind: output, shape index: {}]  }
   0x1   :  { %15 = vsyncpa [#allocation6], 0  ;;  %s36_s11 = sshll.u32 %s510_s3, 4  ;;  %s37_s11 = int_to_ptr.hbm [resolvable:$true] %s36_s11 }
   0x2   :  { %16 = vsyncpa [#allocation4], 0  ;;  %s411_s12 = smov [#allocation5]   ;;  %s22_s16 = sshll.u32 %s507_s0, 4  ;;  %s23_s16 = int_to_ptr.hbm [resolvable:$true] %s22_s16 }
   0x3   :  { %s38_s13 = sshll.u32 %s411_s12, 4  ;;  %s412_s17 = smov 64   ;;  %s39_s13 = int_to_ptr.vmem [resolvable:$true] %s38_s13 }
   0x4   :  { %s413_s18 = smov 4   ;;  %s414_s19 = smov [#allocation2]  }
   0x5   :  { %44 = dma.hbm_to_vmem [thread:$0]  %s37_s11, 256, %s39_s13, [#allocation6], %s412_s17, %s412_s17, %s413_s18  }
   0x6   :  { %s24_s20 = sshll.u32 %s414_s19, 4  ;;  %s51_s23 = sshll.u32 %s512_s5, 4  ;;  %s25_s20 = int_to_ptr.vmem [resolvable:$true] %s24_s20  ;;  %s52_s23 = int_to_ptr.hbm [resolvable:$true] %s51_s23 }
   0x7   :  { %27 = dma.hbm_to_vmem [thread:$0]  %s23_s16, 128, %s25_s20, [#allocation3]  }
   0x8   :  { %s415_s3 = smov [#allocation7]  }
   0x9   :  { %s53_s24 = sshll.u32 %s415_s3, 4  ;;  %s54_s24 = int_to_ptr.vmem [resolvable:$true] %s53_s24 }
   0xa   :  { %59 = dma.hbm_to_vmem [thread:$0]  %s52_s23, 256, %s54_s24, [#allocation6], %s412_s17, %s412_s17, %s413_s18  }
   0xb   :  { %405 = dma.done.wait [#allocation3], 128  }
   0xc   :  { %406 = vsyncadd [#allocation3], 4294967168 }
   0xd   :  { %407 = dma.done.wait [#allocation6], 512  }
   0xe   :  { %408 = vsyncadd [#allocation6], 4294966784  ;;  %v292_v0 = vld [vmem:[%s508_s1 + $0x8] sm:$0xff]  ;;  %v291_v1 = vld [vmem:[%s508_s1] sm:$0xff]  ;;  %vm101_vm0 = vcmask 261120   ;;  %s416_s15 = smov [#allocation8]  }
   0xf   :  { %111 = vmatpush.bf16.msra.mxu0 %v292_v0  ;;  %v79_v2 = vld [vmem:[#allocation2] sm:$0xff]  ;;  %v294_v4 = vld [vmem:[#allocation5 + $0x8] sm:$0xff]  ;;  %v293_v5 = vld [vmem:[#allocation5] sm:$0xff]  ;;  %s242_s16 = sshll.u32 %s416_s15, 4  ;;  %s244_s18 = sshll.u32 %s516_s9, 4  ;;  %vm235_vm1 = vcmask 64512   ;;  %s243_s16 = int_to_ptr.vmem [resolvable:$true] %s242_s16  ;;  %s245_s18 = int_to_ptr.hbm [resolvable:$true] %s244_s18 }
  0x10   :  { %v80_v3 = vpack.c.bf16 %v79_v2, %v79_v2  ;;  %150 = vmatpush.bf16.msra.mxu1 %v294_v4  ;;  %v305_v6 = vld [vmem:[%s509_s2] ss:$0 sm:$0xff]  ;;  %v295_v14 = vld [vmem:[#allocation7] sm:$0xff]  ;;  %v298_v22 = vld [vmem:[%s514_s7 + $0x8] sm:$0xff] }
  0x11   :  { %v296_v13 = vld [vmem:[#allocation7 + $0x8] sm:$0xff]  ;;  %228 = vmatpush.bf16.msra.mxu3 %v298_v22 }
  0x12   :  { %189 = vmatpush.bf16.msra.mxu2 %v296_v13  ;;  %v306_v15 = vld [vmem:[%s511_s4] ss:$0 sm:$0xff] }
  0x13   :  { %112 = vmatpush.bf16.msra.mxu0 %v291_v1  ;;  %v297_v23 = vld [vmem:[%s514_s7] sm:$0xff] }
  0x14   :  { %151 = vmatpush.bf16.msra.mxu1 %v293_v5  ;;  %v307_v24 = vld [vmem:[%s513_s6] ss:$0 sm:$0xff] }
  0x15   :  { %229 = vmatpush.bf16.msra.mxu3 %v297_v23  ;;  %v308_v31 = vld [vmem:[%s515_s8] ss:$0 sm:$0xff] }
  0x16   :  { %263 = vmatmul.msk.bf16.vlgmr.msra.gmra.mxu0 %vm101_vm0, %v80_v3  ;;  %190 = vmatpush.bf16.msra.mxu2 %v295_v14 }
  0x93   :  { %v114_v7 = vpop.f32.mrf.mxu0 }
  0x94   :  { %v115_v8 = vadd.f32 %v305_v6, %v114_v7 }
  0x96   :  { %v118_v9 = vmul.f32 0.01, %v115_v8 }
  0x98   :  { %v119_v10 = vmax.f32 %v115_v8, %v118_v9 }
  0x9a   :  { %v120_v11 = vpack.c.bf16 %v119_v10, %v119_v10 }
  0x9b   :  { %v116_v12 = vpop.f32.mrf.mxu0 }
  0x9c   :  { %272 = vmatmul.msk.bf16.vlgmr.msra.gmra.mxu1 %vm101_vm0, %v120_v11 }
 0x119   :  { %v153_v16 = vpop.f32.mrf.mxu1 }
 0x11a   :  { %v154_v17 = vadd.f32 %v306_v15, %v153_v16 }
 0x11c   :  { %v157_v18 = vmul.f32 0.01, %v154_v17 }
 0x11e   :  { %v158_v19 = vmax.f32 %v154_v17, %v157_v18 }
 0x120   :  { %v159_v20 = vpack.c.bf16 %v158_v19, %v158_v19 }
 0x121   :  { %v155_v21 = vpop.f32.mrf.mxu1 }
 0x122   :  { %281 = vmatmul.msk.bf16.vlgmr.msra.gmra.mxu2 %vm101_vm0, %v159_v20 }
 0x1a5   :  { %v192_v25 = vpop.f32.mrf.mxu2 }
 0x1a6   :  { %v193_v26 = vadd.f32 %v307_v24, %v192_v25 }
 0x1a8   :  { %v196_v27 = vmul.f32 0.01, %v193_v26 }
 0x1aa   :  { %v197_v28 = vmax.f32 %v193_v26, %v196_v27 }
 0x1ac   :  { %v198_v29 = vpack.c.bf16 %v197_v28, %v197_v28 }
 0x1ad   :  { %v194_v30 = vpop.f32.mrf.mxu2 }
 0x1ae   :  { %290 = vmatmul.msk.bf16.vlgmr.msra.gmra.mxu3 %vm101_vm0, %v198_v29 }
 0x231   :  { %v231_v32 = vpop.f32.mrf.mxu3 }
 0x232   :  { %v232_v33 = vadd.f32 %v308_v31, %v231_v32 }
 0x234   :  { %236 = vst.msk [vmem:[#allocation8] sm:$0xff] %vm235_vm1, %v232_v33 }
 0x235   :  { %247 = dma.vmem_to_hbm [thread:$0]  %s243_s16, 128, %s245_s18, [#allocation4]  }
 0x239   :  { %v233_v34 = vpop.f32.mrf.mxu3 }
 0x23a   :  { %409 = dma.done.wait [#allocation4], 128  }
 0x23b   :  { %410 = vsyncadd [#allocation4], 4294967168 }
 0x23c   :  { %252 = vsyncpa [#allocation3], 1 }
 0x23d   :  { %253 = vsyncpa [#allocation6], 1 }
 0x23e   :  { %254 = vsyncpa [#allocation4], 1 }

</bundles_post_ra>
